<compile_context>
chip_gen: v7x
topology: tpu7x:2x2x1
jax: 0.10.0
libtpu: 0.0.40
codegen_flags: <defaults>
</compile_context>

<pallas_src>
import functools
import math

import jax
import jax.numpy as jnp
from jax.experimental import pallas as pl
from jax.experimental.pallas import tpu as pltpu

EPS = 1e-6  # timm SigLIP ViT LayerNorm eps


# ---------------------------------------------------------------------------
# in-kernel helpers (f32 math)
# ---------------------------------------------------------------------------
def _ln(x, g, b):
    mu = jnp.mean(x, axis=-1, keepdims=True)
    var = jnp.mean((x - mu) ** 2, axis=-1, keepdims=True)
    return (x - mu) * jax.lax.rsqrt(var + EPS) * g + b


def _gelu(x):
    # tanh-approx GELU (EUP tanh slot); torch.nn.GELU (erf) differs <2e-3.
    c = 0.7978845608028654  # sqrt(2/pi)
    return 0.5 * x * (1.0 + jnp.tanh(c * (x + 0.044715 * x * x * x)))


def _softmax_last(s):
    s = s - jnp.max(s, axis=-1, keepdims=True)
    p = jnp.exp(s)
    return p * pl.reciprocal(jnp.sum(p, axis=-1, keepdims=True), approx=True)


# ---------------------------------------------------------------------------
# kernel 1: patch embedding (conv-as-matmul) + positional embedding
# ---------------------------------------------------------------------------
def patch_embed_kernel(patches_ref, wpatch_ref, pos_ref, out_ref):
    B, N, Cpp = patches_ref.shape
    D = wpatch_ref.shape[1]
    p = patches_ref[...].reshape(B * N, Cpp)                      # bf16
    y = jnp.dot(p, wpatch_ref[...], preferred_element_type=jnp.float32)
    out_ref[...] = y.reshape(B, N, D) + pos_ref[...]              # pos has conv bias folded in


# ---------------------------------------------------------------------------
# kernel 2: all transformer blocks; grid=(batch_tiles, depth)
# residual stream == VMEM-resident output block (same index across depth)
# ---------------------------------------------------------------------------
def blocks_kernel(x0_ref, wqkv_ref, wo_ref, wfc1_ref, wfc2_ref, vec_ref,
                  xout_ref, attn_scr, *, BT, N, D, NH, HD, M, G):
    bf16 = jnp.bfloat16
    f32 = jnp.float32
    R = BT * N
    layer = pl.program_id(1)

    # layer 0: load this batch-tile's embedded tokens into the resident block
    @pl.when(layer == 0)
    def _():
        xout_ref[...] = x0_ref[...]

    x = xout_ref[...].reshape(R, D)                               # residual, f32
    vec = vec_ref[0]                                              # (4, Wv) packed vectors
    g1, b1 = vec[0:1, 0:D], vec[0:1, D:2 * D]
    g2, b2 = vec[0:1, 2 * D:3 * D], vec[0:1, 3 * D:4 * D]
    bqkv, bo = vec[1:2, 0:3 * D], vec[1:2, 3 * D:4 * D]
    bfc1, bfc2 = vec[2:3, 0:M], vec[3:4, 0:D]

    # --- attention (pre-LN); 1/sqrt(HD) folded into q weights ---
    h = _ln(x, g1, b1)
    qkv = jnp.dot(h.astype(bf16), wqkv_ref[0], preferred_element_type=f32) + bqkv
    qkv3 = qkv.reshape(BT, N, 3 * D)
    for hh in range(NH):                      # static unroll over heads
        q = qkv3[:, :, hh * HD:(hh + 1) * HD].astype(bf16)
        k = qkv3[:, :, D + hh * HD:D + (hh + 1) * HD].astype(bf16)
        v = qkv3[:, :, 2 * D + hh * HD:2 * D + (hh + 1) * HD].astype(bf16)
        s = jnp.einsum('bqd,bkd->bqk', q, k, preferred_element_type=f32)
        p = _softmax_last(s)
        o = jnp.einsum('bqk,bkd->bqd', p.astype(bf16), v, preferred_element_type=f32)
        attn_scr[:, :, hh * HD:(hh + 1) * HD] = o                 # assemble heads in VMEM slab
    attn = attn_scr[...].reshape(R, D)
    # single full-K (D) output projection instead of NH K=HD matmuls
    x = x + jnp.dot(attn.astype(bf16), wo_ref[0], preferred_element_type=f32) + bo

    # --- MLP (pre-LN, GELU), row-tiled by groups of G images so the (rows, M)
    #     f32 intermediate stays small in VMEM ---
    for t in range(BT // G):
        r0 = t * G * N
        xt = x[r0:r0 + G * N, :]
        ht = _ln(xt, g2, b2)
        mt = jnp.dot(ht.astype(bf16), wfc1_ref[0], preferred_element_type=f32) + bfc1
        mt = _gelu(mt)
        mt = jnp.dot(mt.astype(bf16), wfc2_ref[0], preferred_element_type=f32) + bfc2
        xout_ref[t * G:(t + 1) * G, :, :] = (xt + mt).reshape(G, N, D)


# ---------------------------------------------------------------------------
# kernel 3: final LayerNorm + MAP (latent-query) attention pooling head
# ---------------------------------------------------------------------------
def pool_head_kernel(x_ref, lat_ref, wq_ref, wkv_ref, wproj_ref, wp1_ref,
                     wp2_ref, pvec_ref, out_ref, *, B, N, D, NH, HD, M):
    bf16 = jnp.bfloat16
    f32 = jnp.float32
    BN = B * N
    pv = pvec_ref[...]
    fg, fb = pv[0:1, 0:D], pv[0:1, D:2 * D]
    pg, pb = pv[0:1, 2 * D:3 * D], pv[0:1, 3 * D:4 * D]
    bq, bkv, bpr = pv[1:2, 0:D], pv[1:2, D:3 * D], pv[1:2, 3 * D:4 * D]
    bp1, bp2 = pv[2:3, 0:M], pv[3:4, 0:D]

    # 0/1 head-segment matrices (all heads handled at once, no per-head loop)
    d_idx = jax.lax.broadcasted_iota(jnp.int32, (D, NH), 0) // HD
    h_idx = jax.lax.broadcasted_iota(jnp.int32, (D, NH), 1)
    seg_dh = (d_idx == h_idx).astype(bf16)                        # (D, NH)
    d_idx2 = jax.lax.broadcasted_iota(jnp.int32, (NH, D), 1) // HD
    h_idx2 = jax.lax.broadcasted_iota(jnp.int32, (NH, D), 0)
    seg_hd = (d_idx2 == h_idx2).astype(bf16)                      # (NH, D)

    xn = _ln(x_ref[...].reshape(BN, D), fg, fb)                   # final norm
    q = jnp.dot(lat_ref[...], wq_ref[...], preferred_element_type=f32) + bq   # (1, D), scale folded
    kv = jnp.dot(xn.astype(bf16), wkv_ref[...], preferred_element_type=f32) + bkv
    k_all, v_all = kv[:, 0:D], kv[:, D:2 * D]                     # (BN, D)

    # per-head scores for all heads at once: (BN, NH)
    s = jnp.dot((k_all * q).astype(bf16), seg_dh, preferred_element_type=f32)
    s3 = s.reshape(B, N, NH)
    s3 = s3 - jnp.max(s3, axis=1, keepdims=True)
    p = jnp.exp(s3)
    p = p * pl.reciprocal(jnp.sum(p, axis=1, keepdims=True), approx=True)
    # expand head weights back onto the feature axis and pool over tokens
    p_full = jnp.dot(p.reshape(BN, NH).astype(bf16), seg_hd,
                     preferred_element_type=f32)                  # (BN, D)
    pooled = jnp.sum((p_full * v_all).reshape(B, N, D), axis=1)   # (B, D), heads concatenated
    pooled = jnp.dot(pooled.astype(bf16), wproj_ref[...],
                     preferred_element_type=f32) + bpr

    # residual MLP on the pooled latent token
    hp = _ln(pooled, pg, pb)
    mm = jnp.dot(hp.astype(bf16), wp1_ref[...], preferred_element_type=f32) + bp1
    mm = _gelu(mm)
    mm = jnp.dot(mm.astype(bf16), wp2_ref[...], preferred_element_type=f32) + bp2
    out_ref[...] = (pooled + mm).astype(out_ref.dtype)


# ---------------------------------------------------------------------------
# model wrapper
# ---------------------------------------------------------------------------
class SigLIPViTPallas:
    def __init__(self, key, *, img_size=16, patch_size=4, in_chans=3,
                 embed_dim=32, depth=2, num_heads=4, mlp_ratio=4):
        assert embed_dim % num_heads == 0
        self.img_size = img_size
        self.patch_size = patch_size
        self.in_chans = in_chans
        self.embed_dim = embed_dim
        self.depth = depth
        self.num_heads = num_heads
        self.head_dim = embed_dim // num_heads
        self.mlp_dim = embed_dim * mlp_ratio
        self.num_patches = (img_size // patch_size) ** 2
        self.out_dim = embed_dim  # == vit.num_features

        D, M = embed_dim, self.mlp_dim
        NH, HD, N = num_heads, self.head_dim, self.num_patches
        Cpp = in_chans * patch_size * patch_size
        self.vec_w = max(M, 4 * D)            # width of packed vector slabs
        scale = 1.0 / math.sqrt(HD)

        keys = iter(jax.random.split(key, max(128, 4 * depth + 16)))

        def W(shape, s=0.02):
            return (s * jax.random.normal(next(keys), shape)).astype(jnp.float32)

        # patch embed; conv bias (zero) folded into the positional embedding
        self.w_patch = W((Cpp, D)).astype(jnp.bfloat16)
        self.pos_b = W((N, D))

        # transformer blocks: matrices stacked over depth (bf16), small vectors
        # packed into one (4, vec_w) f32 slab per layer.
        wqkv_l, wo_l, wfc1_l, wfc2_l, vec_l = [], [], [], [], []
        for _ in range(depth):
            wqkv = W((D, 3 * D))
            wqkv = wqkv.at[:, :D].multiply(scale)   # fold 1/sqrt(HD) into q
            wo = W((D, D))                          # kept un-split (single proj matmul)
            wfc1, wfc2 = W((D, M)), W((M, D))
            vec = jnp.zeros((4, self.vec_w), jnp.float32)
            vec = vec.at[0, 0:D].set(1.0)           # ln1 gamma
            vec = vec.at[0, 2 * D:3 * D].set(1.0)   # ln2 gamma
            # ln betas and all biases are zero (rows 1-3 stay zero)
            wqkv_l.append(wqkv.astype(jnp.bfloat16))
            wo_l.append(wo.astype(jnp.bfloat16))
            wfc1_l.append(wfc1.astype(jnp.bfloat16))
            wfc2_l.append(wfc2.astype(jnp.bfloat16))
            vec_l.append(vec)
        self.blk_wqkv = jnp.stack(wqkv_l)           # (depth, D, 3D)
        self.blk_wo = jnp.stack(wo_l)               # (depth, D, D)
        self.blk_wfc1 = jnp.stack(wfc1_l)           # (depth, D, M)
        self.blk_wfc2 = jnp.stack(wfc2_l)           # (depth, M, D)
        self.blk_vec = jnp.stack(vec_l)             # (depth, 4, vec_w)

        # final norm + MAP attention pooling head
        self.latent = W((1, D)).astype(jnp.bfloat16)
        self.wq = (W((D, D)) * scale).astype(jnp.bfloat16)   # fold 1/sqrt(HD) into q
        self.wkv = W((D, 2 * D)).astype(jnp.bfloat16)
        self.wproj = W((D, D)).astype(jnp.bfloat16)
        self.wp1 = W((D, M)).astype(jnp.bfloat16)
        self.wp2 = W((M, D)).astype(jnp.bfloat16)
        pvec = jnp.zeros((4, self.vec_w), jnp.float32)
        pvec = pvec.at[0, 0:D].set(1.0)             # final-norm gamma
        pvec = pvec.at[0, 2 * D:3 * D].set(1.0)     # pool MLP-norm gamma
        self.pool_vec = pvec

    # ----- forward -----
    def __call__(self, x):
        # x: (B, C, H, W) float32 (NCHW, like the PyTorch module)
        B, C, Himg, Wimg = x.shape
        p = self.patch_size
        nh_, nw_ = Himg // p, Wimg // p
        N = nh_ * nw_
        D, M, NH, HD = self.embed_dim, self.mlp_dim, self.num_heads, self.head_dim
        Cpp = C * p * p
        Wv = self.vec_w

        # im2col for the stride=kernel conv; (c, kh, kw) flattening order
        # matches PyTorch Conv2d weight flattening.  bf16 to halve HBM/VMEM.
        patches = x.reshape(B, C, nh_, p, nw_, p)
        patches = patches.transpose(0, 2, 4, 1, 3, 5).reshape(B, N, Cpp)
        patches = patches.astype(jnp.bfloat16)

        # ---- 1. patch embedding + positional embedding ----
        x0 = pl.pallas_call(
            patch_embed_kernel,
            out_shape=jax.ShapeDtypeStruct((B, N, D), jnp.float32),
        )(patches, self.w_patch, self.pos_b)

        # ---- 2. transformer blocks ----
        num_bt = 2 if (B % 2 == 0 and B >= 2) else 1   # megacore batch split (v7x)
        BT = B // num_bt
        # MLP row-tile granularity: groups of G images (~<=512 rows per tile)
        G = max(1, min(BT, max(1, 512 // N)))
        while BT % G != 0:
            G -= 1

        # explicit VMEM budget: double-buffered per-layer weights + resident
        # activation blocks + per-step intermediates, with 2x headroom.
        per_layer_w = (D * 3 * D + D * D + D * M + M * D) * 2 + 4 * Wv * 4
        act = BT * N * D * 4
        est = (2 * per_layer_w + 3 * act
               + (BT * N * 3 * D + BT * N * N + G * N * (M + D)) * 4)
        vmem_limit = int(min(max(2 * est, 32 * 1024 * 1024), 120 * 1024 * 1024))

        blk = functools.partial(blocks_kernel, BT=BT, N=N, D=D, NH=NH, HD=HD,
                                M=M, G=G)
        x_tok = pl.pallas_call(
            blk,
            out_shape=jax.ShapeDtypeStruct((B, N, D), jnp.float32),
            grid=(num_bt, self.depth),
            in_specs=[
                pl.BlockSpec((BT, N, D), lambda bt, l: (bt, 0, 0)),      # x0 (layer 0)
                pl.BlockSpec((1, D, 3 * D), lambda bt, l: (l, 0, 0)),    # wqkv[l]
                pl.BlockSpec((1, D, D), lambda bt, l: (l, 0, 0)),        # wo[l]
                pl.BlockSpec((1, D, M), lambda bt, l: (l, 0, 0)),        # wfc1[l]
                pl.BlockSpec((1, M, D), lambda bt, l: (l, 0, 0)),        # wfc2[l]
                pl.BlockSpec((1, 4, Wv), lambda bt, l: (l, 0, 0)),       # packed vectors[l]
            ],
            out_specs=pl.BlockSpec((BT, N, D), lambda bt, l: (bt, 0, 0)),  # residual stream
            scratch_shapes=[pltpu.VMEM((BT, N, D), jnp.float32)],          # head-assembly slab
            compiler_params=pltpu.CompilerParams(
                dimension_semantics=("parallel", "arbitrary"),
                vmem_limit_bytes=vmem_limit),
        )(x0, self.blk_wqkv, self.blk_wo, self.blk_wfc1, self.blk_wfc2,
          self.blk_vec)

        # ---- 3. final LayerNorm + MAP pooling head ----
        pool = functools.partial(pool_head_kernel, B=B, N=N, D=D, NH=NH,
                                 HD=HD, M=M)
        out = pl.pallas_call(
            pool,
            out_shape=jax.ShapeDtypeStruct((B, D), jnp.float32),
        )(x_tok, self.latent, self.wq, self.wkv, self.wproj, self.wp1,
          self.wp2, self.pool_vec)
        return out  # (B, out_dim)


if __name__ == "__main__":
    key = jax.random.PRNGKey(0)
    k_model, k_data = jax.random.split(key)

    model = SigLIPViTPallas(k_model, img_size=16, patch_size=4, in_chans=3,
                            embed_dim=32, depth=2, num_heads=4, mlp_ratio=4)

    x = jax.random.normal(k_data, (2, 3, 16, 16), dtype=jnp.float32)
    emb = model(x)
    jax.block_until_ready(emb)
    assert emb.shape == (2, model.out_dim) and emb.dtype == jnp.float32
    print("KERNEL_OK")
</pallas_src>

<mosaic_0001>
module attributes {stable_mosaic.version = 11 : i64} {
  func.func @patch_embed_kernel(%arg0: memref<2x16x48xbf16, #tpu.memory_space<vmem>>, %arg1: memref<48x32xbf16, #tpu.memory_space<vmem>>, %arg2: memref<16x32xf32, #tpu.memory_space<vmem>>, %arg3: memref<2x16x32xf32, #tpu.memory_space<vmem>>) attributes {dimension_semantics = [], scalar_prefetch = 0 : i64, scratch_operands = 0 : i64, tpu.core_type = #tpu.core_type<tc>} {
    %c0 = arith.constant 0 : index
    %c0_0 = arith.constant 0 : index
    %c0_1 = arith.constant 0 : index
    %0 = vector.load %arg0[%c0, %c0_0, %c0_1] : memref<2x16x48xbf16, #tpu.memory_space<vmem>>, vector<2x16x48xbf16>
    %1 = vector.shape_cast %0 : vector<2x16x48xbf16> to vector<32x48xbf16>
    %c0_2 = arith.constant 0 : index
    %c0_3 = arith.constant 0 : index
    %2 = vector.load %arg1[%c0_2, %c0_3] : memref<48x32xbf16, #tpu.memory_space<vmem>>, vector<48x32xbf16>
    %cst = arith.constant dense<0.000000e+00> : vector<32x32xf32>
    %3 = tpu.matmul %1, %2, %cst {dimension_numbers = #tpu.dot_dimension_numbers<[1], [0], [0], [1], [0, 0, 1, 1], [], []>} : vector<32x48xbf16>, vector<48x32xbf16>, vector<32x32xf32> -> vector<32x32xf32>
    %4 = vector.shape_cast %3 : vector<32x32xf32> to vector<2x16x32xf32>
    %c0_4 = arith.constant 0 : index
    %c0_5 = arith.constant 0 : index
    %5 = vector.load %arg2[%c0_4, %c0_5] : memref<16x32xf32, #tpu.memory_space<vmem>>, vector<16x32xf32>
    %6 = vector.shape_cast %5 : vector<16x32xf32> to vector<1x16x32xf32>
    %7 = vector.broadcast %6 : vector<1x16x32xf32> to vector<2x16x32xf32>
    %8 = arith.addf %4, %7 : vector<2x16x32xf32>
    %c0_6 = arith.constant 0 : index
    %c0_7 = arith.constant 0 : index
    %c0_8 = arith.constant 0 : index
    %9 = vector.load %arg3[%c0_6, %c0_7, %c0_8] : memref<2x16x32xf32, #tpu.memory_space<vmem>>, vector<2x16x32xf32>
    tpu.vector_store %arg3[%c0_6, %c0_7, %c0_8], %8 {strides = array<i32>} : memref<2x16x32xf32, #tpu.memory_space<vmem>>, vector<2x16x32xf32>,
    return
  }
}

</mosaic_0001>

<bundles_post_ra>
// kernel: tpu_custom_call.1
= control target key start
LH: loop header
LB: loop body
LE: loop exit
PB: predicated region body
PF: predicated region fallthrough
CT: control target
= control target key end

     0   :  { %vm54_vm0 = vcmask 392192   ;;  %s247_s0 = inlined_call_operand.vmem [shape: bf16[2,16,48], index: 0, kind: input, shape index: {}]   ;;  %s248_s1 = inlined_call_operand.vmem [shape: bf16[48,32], index: 1, kind: input, shape index: {}]   ;;  %s249_s2 = inlined_call_operand.vmem [shape: f32[16,32], index: 2, kind: input, shape index: {}]   ;;  %s250_s3 = inlined_call_operand.hbm [shape: f32[2,16,32], index: 3, kind: output, shape index: {}]  }
   0x1   :  { %v162_v0 = vld [vmem:[%s248_s1] sm:$0xff]   ;;  %v163_v1 = vld [vmem:[%s248_s1 + $0x8] sm:$0xff]   ;;  %v164_v3 = vld [vmem:[%s248_s1 + $0x10] sm:$0xff]  }
   0x2   :  { %149 = vmatprep.subr.bf16.mxu0 %v162_v0  ;;  %v165_v2 = vld [vmem:[%s247_s0] sm:$0xff]  }
   0x3   :  { %150 = vmatpush3.bf16.msra.mxu0 %v162_v0  ;;  %155 = vmatprep.mubr.msk.bf16.mxu0 %vm54_vm0, %v165_v2 }
   0x4   :  { %151 = vmatprep.subr.bf16.mxu0 %v163_v1 }
   0x5   :  { %8 = vsyncpa [#allocation3], 0  ;;  %v166_v4 = vld [vmem:[%s247_s0 + $0x8] sm:$0xff]   ;;  %v110_v5 = vld [vmem:[%s249_s2] sm:$0xff]  ;;  %vm116_vm1 = vcmask 261120   ;;  %s191_s1 = smov [#allocation2]  }
   0x6   :  { %v111_v7 = vld [vmem:[%s249_s2 + $0x8] sm:$0xff]  ;;  %s126_s26 = sshll.u32 %s191_s1, 4  ;;  %s127_s26 = int_to_ptr.vmem [resolvable:$true] %s126_s26 }
   0x7   :  { %152 = vmatpush3.bf16.msra.mxu0 %v163_v1  ;;  %s167_s0 = scalar_lea.vmem %s127_s26, 512  ;;  %p172_p1 = scmp.lt.s32.totalorder %s127_s26, %s127_s26 }
   0x8   :  { %153 = vmatprep.subr.bf16.mxu0 %v164_v3  ;;  %p168_p0 = scmp.ne.s32.totalorder %s127_s26, %s167_s0  ;;  %p173_p2 = scmp.lt.s32.totalorder %s167_s0, %s167_s0 }
   0xa   :  { %p174_p3 = por %p173_p2, %p172_p1 }
   0xb   :  { %154 = vmatpush3.bf16.msra.mxu0 %v164_v3 }
   0xc   :  { %p175_p4 = pnand %p174_p3, %p168_p0 }
   0xe   :  { %156 = vmatmul.mubr.msk.bf16.vlgmr.msra.gmra.mrb[0].mxu0 %vm54_vm0, %v166_v4 }
  0xe1   :  { %v157_v6 = vpop.f32.mrb[0].mxu0 }
  0xe2   :  { %v114_v8 = vadd.f32 %v157_v6, %v110_v5  ;;  %v95_v9 = vpop.f32.mrb[1].mxu0 }
  0xe3   :  { %v112_v10 = vadd.f32 %v110_v5, %v95_v9  ;;  %v158_v11 = vpop.f32.mrb[2].mxu0 }
  0xe4   :  { %119 = vst.msk [vmem:[#allocation2 + $0x10] sm:$0xff] %vm116_vm1, %v114_v8  ;;  %v115_v12 = vadd.f32 %v158_v11, %v111_v7  ;;  %v98_v13 = vpop.f32.mrb[3].mxu0 }
  0xe5   :  { %117 = vst.msk [vmem:[#allocation2] sm:$0xff] %vm116_vm1, %v112_v10  ;;  %v113_v14 = vadd.f32 %v111_v7, %v98_v13 }
  0xe6   :  { %120 = vst.msk [vmem:[#allocation2 + $0x18] sm:$0xff] %vm116_vm1, %v115_v12 }
  0xe7   :  { %118 = vst.msk [vmem:[#allocation2 + $0x8] sm:$0xff] %vm116_vm1, %v113_v14 }
  0xe8   :  { %178 = shalt.err (!%p175_p4)
}
  0xe9   :  { %s179_s28 = scalar_lea.hbm %s250_s3, 512 }
  0xea   :  { %p180_p5 = scmp.ne.s32.totalorder %s250_s3, %s179_s28  ;;  %p183_p6 = scmp.lt.u32.totalorder %s179_s28, %s250_s3 }
  0xec   :  { %p185_p7 = pnand %p183_p6, %p180_p5 }
  0xee   :  { %188 = shalt.err (!%p185_p7)
}
  0xef   :  { %s192_s6 = smov 128   ;;  %s193_s7 = smov 8  }
  0xf0   :  { %132 = dma.vmem_to_hbm [thread:$0]  %s127_s26, 512, %s250_s3, [#allocation3], %s192_s6, %s192_s6, %s193_s7  }
  0xf1   :  { %189 = dma.done.wait [#allocation3], 512  }
  0xf2   :  { %190 = vsyncadd [#allocation3], 4294966784 }
  0xf3   :  { %136 = vsyncpa [#allocation3], 1 }

</bundles_post_ra>
